<compile_context>
chip_gen: v6e
topology: v6e:2x2x1
jax: 0.10.0
libtpu: 0.0.40
codegen_flags: <defaults>
</compile_context>

<pallas_src>
import functools

import jax
import jax.numpy as jnp
from jax.experimental import pallas as pl
from jax.experimental.pallas import tpu as pltpu

# ---------------- model hyper-parameters (compile-time constants) ----------------
TEMP = 0.5
LATENT_NUM = 4
LATENT_DIM = 8
LATENT_FLAT = LATENT_NUM * LATENT_DIM   # 32
IN_DIM = 784                            # 28*28 MNIST (x.view(-1, 784))
IN_PAD = 896                            # 7*128: lane-dense padding of the OUTPUT only
HIDDEN = 128
BATCH = 2                               # small demo batch


def _vae_fwd_kernel(
    x_ref, g_ref,                            # (TILE_B, 784) bf16, (TILE_B, 32) f32
    w1_ref, b1_ref, w2_ref, b2_ref,          # encoder (bf16 weights, f32 biases)
    w3_ref, b3_ref, w4_ref, b4_ref,          # decoder (bf16 weights, f32 biases)
    latz_ref, xr_ref,                        # outputs: [log_alpha|z|0] packed, x_recon
    *, temp, latent_num, latent_dim,
):
    f32 = jnp.float32
    bf16 = jnp.bfloat16
    lf = latent_num * latent_dim
    tb = latz_ref.shape[0]

    # ---------------- encoder MLP (bf16 MXU, f32 accumulate) ----------------
    x = x_ref[...]                                                 # already bf16
    h = jnp.dot(x, w1_ref[...], preferred_element_type=f32) + b1_ref[...]
    h = jnp.maximum(h, 0.0)
    log_alpha = (jnp.dot(h.astype(bf16), w2_ref[...], preferred_element_type=f32)
                 + b2_ref[...])                                    # (tb, 32) f32

    # ------------- RelaxedOneHotCategorical rsample (Gumbel-softmax) -------------
    # z = softmax((log_alpha + gumbel)/temp) per latent group of `latent_dim` lanes.
    # Per-GROUP max shift (4 static slices of 8 lanes) -> robust even under large
    # logit spread; exact normalization keeps each group's sum == 1.
    y = (log_alpha + g_ref[...]) * (1.0 / temp)                    # (tb, 32) f32
    parts = []
    for gidx in range(latent_num):                                 # static unroll (4)
        yg = y[:, gidx * latent_dim:(gidx + 1) * latent_dim]       # (tb, 8)
        yg = yg - jnp.max(yg, axis=-1, keepdims=True)
        eg = jnp.exp(yg)
        parts.append(eg / jnp.sum(eg, axis=-1, keepdims=True))
    z = jnp.concatenate(parts, axis=-1)                            # (tb, 32) f32

    # ---- pack log_alpha | z | zeros into one 128-lane output (unmasked store) ----
    pad = jnp.zeros((tb, 128 - 2 * lf), f32)
    latz_ref[...] = jnp.concatenate([log_alpha, z, pad], axis=-1)

    # ---------------- decoder MLP + sigmoid ----------------
    h2 = jnp.dot(z.astype(bf16), w3_ref[...], preferred_element_type=f32) + b3_ref[...]
    h2 = jnp.maximum(h2, 0.0)
    logits = (jnp.dot(h2.astype(bf16), w4_ref[...], preferred_element_type=f32)
              + b4_ref[...])                                       # (tb, 896) f32
    xr_ref[...] = jax.nn.sigmoid(logits)


def _pick_tile_b(batch):
    """Large tiles amortize per-grid-step overhead; keep >=2 steps when possible
    so dimension_semantics=("parallel",) can shard the batch across both
    TensorCores on v7x.  Capped at 512 rows (double-buffered working set stays
    well inside the default scoped VMEM on every generation)."""
    b8 = 8 * ((batch + 7) // 8)
    if b8 <= 16:
        return b8                                   # tiny batch: single small tile
    half = 8 * (((batch + 1) // 2 + 7) // 8)
    return max(8, min(512, half))


def vae_forward(x, params, key):
    """x: (B, 1, 28, 28) or (B, 784).  Returns (z, x_recon, log_alpha)."""
    w1, b1, w2, b2, w3, b3, w4, b4 = params
    B = x.shape[0]
    x2 = x.reshape(B, -1)
    assert x2.shape[1] == IN_DIM

    tile_b = _pick_tile_b(B)
    n_tiles = pl.cdiv(B, tile_b)
    B_pad = n_tiles * tile_b

    # bf16 input (halves input HBM traffic); only the batch dim is padded.
    x_in = x2.astype(jnp.bfloat16)
    if B_pad != B:
        x_in = jnp.pad(x_in, ((0, B_pad - B), (0, 0)))

    # Gumbel(0,1) noise for the relaxed-categorical rsample (drawn on host side;
    # in-kernel PRNG has no CPU/interpret lowering).
    gumbel = jax.random.gumbel(key, (B_pad, LATENT_FLAT), jnp.float32)

    kernel = functools.partial(
        _vae_fwd_kernel, temp=TEMP, latent_num=LATENT_NUM, latent_dim=LATENT_DIM)

    def tiled(shape):
        # batch-tiled arrays follow the grid index
        return pl.BlockSpec(shape, lambda i: (i, 0))

    def resident(shape):
        # weights/biases: constant block index -> stay VMEM-resident across batch tiles
        return pl.BlockSpec(shape, lambda i: (0, 0))

    grid_spec = pltpu.PrefetchScalarGridSpec(
        num_scalar_prefetch=0,
        grid=(n_tiles,),
        in_specs=[
            tiled((tile_b, IN_DIM)),            # x (bf16, 784 lanes = full dim)
            tiled((tile_b, LATENT_FLAT)),       # gumbel noise (f32, 32 lanes = full dim)
            resident(w1.shape), resident(b1.shape),
            resident(w2.shape), resident(b2.shape),
            resident(w3.shape), resident(b3.shape),
            resident(w4.shape), resident(b4.shape),
        ],
        out_specs=(
            tiled((tile_b, 128)),               # [log_alpha | z | 0]   (lane-dense)
            tiled((tile_b, IN_PAD)),            # x_recon (896 lanes, lane-dense)
        ),
    )

    mac = IN_DIM * HIDDEN + HIDDEN * LATENT_FLAT + LATENT_FLAT * HIDDEN + HIDDEN * IN_PAD
    cost = pl.CostEstimate(
        flops=int(2 * B_pad * mac),
        transcendentals=int(B_pad * (LATENT_FLAT + IN_PAD)),
        bytes_accessed=int(
            B_pad * IN_DIM * 2 + B_pad * LATENT_FLAT * 4          # x (bf16), noise (f32)
            + B_pad * 128 * 4 + B_pad * IN_PAD * 4                # outputs (f32)
            + 2 * mac                                             # bf16 weights
            + 4 * (HIDDEN + LATENT_FLAT + HIDDEN + IN_PAD)),      # f32 biases
    )

    latz, xrec = pl.pallas_call(
        kernel,
        grid_spec=grid_spec,
        out_shape=(
            jax.ShapeDtypeStruct((B_pad, 128), jnp.float32),      # [log_alpha | z | 0]
            jax.ShapeDtypeStruct((B_pad, IN_PAD), jnp.float32),   # x_recon (padded)
        ),
        compiler_params=pltpu.CompilerParams(
            dimension_semantics=("parallel",)),                   # megacore on v7x
        cost_estimate=cost,
    )(x_in, gumbel, w1, b1, w2, b2, w3, b3, w4, b4)

    # glue: slice padding away, reshape to PyTorch (B, latent_num, latent_dim) convention
    log_alpha = latz[:B, :LATENT_FLAT].reshape(B, LATENT_NUM, LATENT_DIM)
    z = latz[:B, LATENT_FLAT:2 * LATENT_FLAT].reshape(B, LATENT_NUM, LATENT_DIM)
    x_recon = xrec[:B, :IN_DIM]
    return z, x_recon, log_alpha


def init_params(key):
    """Xavier-uniform Linear weights (stored bf16; decoder output lane-padded to 896)."""
    ks = jax.random.split(key, 4)

    def linear(k, fan_in, fan_out, pad_out=None):
        lim = (6.0 / (fan_in + fan_out)) ** 0.5
        w = jax.random.uniform(k, (fan_in, fan_out), jnp.float32, -lim, lim)
        po = pad_out or fan_out
        w_p = jnp.zeros((fan_in, po), jnp.float32).at[:, :fan_out].set(w)
        b_p = jnp.zeros((1, po), jnp.float32)
        return w_p.astype(jnp.bfloat16), b_p

    w1, b1 = linear(ks[0], IN_DIM, HIDDEN)                        # encoder layer 1
    w2, b2 = linear(ks[1], HIDDEN, LATENT_FLAT)                   # encoder layer 2
    w3, b3 = linear(ks[2], LATENT_FLAT, HIDDEN)                   # decoder layer 1
    w4, b4 = linear(ks[3], HIDDEN, IN_DIM, pad_out=IN_PAD)        # decoder layer 2
    return (w1, b1, w2, b2, w3, b3, w4, b4)


if __name__ == "__main__":
    key = jax.random.PRNGKey(0)
    k_x, k_p, k_n1, k_n2 = jax.random.split(key, 4)

    # MNIST-like input in [0,1): (B, 1, 28, 28)
    x_img = jax.random.uniform(k_x, (BATCH, 1, 28, 28), jnp.float32)
    params = init_params(k_p)

    # small demo batch (single tile)
    z, x_recon, log_alpha = vae_forward(x_img, params, k_n1)
    jax.block_until_ready((z, x_recon, log_alpha))

    assert z.shape == (BATCH, LATENT_NUM, LATENT_DIM)
    assert x_recon.shape == (BATCH, IN_DIM)
    assert log_alpha.shape == (BATCH, LATENT_NUM, LATENT_DIM)
    # z rows are valid relaxed-one-hot samples (softmax over latent_dim)
    assert jnp.allclose(jnp.sum(z, axis=-1), 1.0, atol=1e-4)
    # recon is a sigmoid output
    assert bool(jnp.all((x_recon >= 0.0) & (x_recon <= 1.0)))

    # larger batch exercising the multi-tile (>=2 grid steps) path
    B2 = 300
    x_big = jax.random.uniform(k_x, (B2, 1, 28, 28), jnp.float32)
    z2, xr2, la2 = vae_forward(x_big, params, k_n2)
    jax.block_until_ready((z2, xr2, la2))
    assert z2.shape == (B2, LATENT_NUM, LATENT_DIM)
    assert xr2.shape == (B2, IN_DIM)
    assert jnp.allclose(jnp.sum(z2, axis=-1), 1.0, atol=1e-4)
    assert bool(jnp.all((xr2 >= 0.0) & (xr2 <= 1.0)))

    print("KERNEL_OK")
</pallas_src>

<mosaic_0001>
module attributes {stable_mosaic.version = 11 : i64} {
  func.func @_vae_fwd_kernel(%arg0: i32, %arg1: memref<8x784xbf16, #tpu.memory_space<vmem>>, %arg2: memref<8x32xf32, #tpu.memory_space<vmem>>, %arg3: memref<784x128xbf16, #tpu.memory_space<vmem>>, %arg4: memref<1x128xf32, #tpu.memory_space<vmem>>, %arg5: memref<128x32xbf16, #tpu.memory_space<vmem>>, %arg6: memref<1x32xf32, #tpu.memory_space<vmem>>, %arg7: memref<32x128xbf16, #tpu.memory_space<vmem>>, %arg8: memref<1x128xf32, #tpu.memory_space<vmem>>, %arg9: memref<128x896xbf16, #tpu.memory_space<vmem>>, %arg10: memref<1x896xf32, #tpu.memory_space<vmem>>, %arg11: memref<8x128xf32, #tpu.memory_space<vmem>>, %arg12: memref<8x896xf32, #tpu.memory_space<vmem>>) attributes {dimension_semantics = [#tpu.dimension_semantics<parallel>], iteration_bounds = array<i64: 1>, scalar_prefetch = 0 : i64, scratch_operands = 0 : i64, tpu.core_type = #tpu.core_type<tc>, window_params = [{transform_indices = @transform_0, window_bounds = array<i64: 8, 784>}, {transform_indices = @transform_1, window_bounds = array<i64: 8, 32>}, {pipeline_mode = #tpu.pipeline_mode<synchronous>, transform_indices = @transform_2, window_bounds = array<i64: 784, 128>}, {pipeline_mode = #tpu.pipeline_mode<synchronous>, transform_indices = @transform_3, window_bounds = array<i64: 1, 128>}, {pipeline_mode = #tpu.pipeline_mode<synchronous>, transform_indices = @transform_4, window_bounds = array<i64: 128, 32>}, {pipeline_mode = #tpu.pipeline_mode<synchronous>, transform_indices = @transform_5, window_bounds = array<i64: 1, 32>}, {pipeline_mode = #tpu.pipeline_mode<synchronous>, transform_indices = @transform_6, window_bounds = array<i64: 32, 128>}, {pipeline_mode = #tpu.pipeline_mode<synchronous>, transform_indices = @transform_7, window_bounds = array<i64: 1, 128>}, {pipeline_mode = #tpu.pipeline_mode<synchronous>, transform_indices = @transform_8, window_bounds = array<i64: 128, 896>}, {pipeline_mode = #tpu.pipeline_mode<synchronous>, transform_indices = @transform_9, window_bounds = array<i64: 1, 896>}, {transform_indices = @transform_10, window_bounds = array<i64: 8, 128>}, {transform_indices = @transform_11, window_bounds = array<i64: 8, 896>}]} {
    %c0 = arith.constant 0 : index
    %c0_0 = arith.constant 0 : index
    %0 = vector.load %arg1[%c0, %c0_0] : memref<8x784xbf16, #tpu.memory_space<vmem>>, vector<8x784xbf16>
    %c0_1 = arith.constant 0 : index
    %c0_2 = arith.constant 0 : index
    %1 = vector.load %arg3[%c0_1, %c0_2] : memref<784x128xbf16, #tpu.memory_space<vmem>>, vector<784x128xbf16>
    %cst = arith.constant dense<0.000000e+00> : vector<8x128xf32>
    %2 = tpu.matmul %0, %1, %cst {dimension_numbers = #tpu.dot_dimension_numbers<[1], [0], [0], [1], [0, 0, 1, 1], [], []>} : vector<8x784xbf16>, vector<784x128xbf16>, vector<8x128xf32> -> vector<8x128xf32>
    %c0_3 = arith.constant 0 : index
    %c0_4 = arith.constant 0 : index
    %3 = vector.load %arg4[%c0_3, %c0_4] : memref<1x128xf32, #tpu.memory_space<vmem>>, vector<1x128xf32>
    %4 = vector.broadcast %3 : vector<1x128xf32> to vector<8x128xf32>
    %5 = arith.addf %2, %4 : vector<8x128xf32>
    %cst_5 = arith.constant 0.000000e+00 : f32
    %6 = vector.broadcast %cst_5 : f32 to vector<8x128xf32>
    %7 = arith.maximumf %5, %6 : vector<8x128xf32>
    %8 = arith.truncf %7 : vector<8x128xf32> to vector<8x128xbf16>
    %c0_6 = arith.constant 0 : index
    %c0_7 = arith.constant 0 : index
    %9 = vector.load %arg5[%c0_6, %c0_7] : memref<128x32xbf16, #tpu.memory_space<vmem>>, vector<128x32xbf16>
    %cst_8 = arith.constant dense<0.000000e+00> : vector<8x32xf32>
    %10 = tpu.matmul %8, %9, %cst_8 {dimension_numbers = #tpu.dot_dimension_numbers<[1], [0], [0], [1], [0, 0, 1, 1], [], []>} : vector<8x128xbf16>, vector<128x32xbf16>, vector<8x32xf32> -> vector<8x32xf32>
    %c0_9 = arith.constant 0 : index
    %c0_10 = arith.constant 0 : index
    %11 = vector.load %arg6[%c0_9, %c0_10] : memref<1x32xf32, #tpu.memory_space<vmem>>, vector<1x32xf32>
    %12 = vector.broadcast %11 : vector<1x32xf32> to vector<8x32xf32>
    %13 = arith.addf %10, %12 : vector<8x32xf32>
    %c0_11 = arith.constant 0 : index
    %c0_12 = arith.constant 0 : index
    %14 = vector.load %arg2[%c0_11, %c0_12] : memref<8x32xf32, #tpu.memory_space<vmem>>, vector<8x32xf32>
    %15 = arith.addf %13, %14 : vector<8x32xf32>
    %cst_13 = arith.constant 2.000000e+00 : f32
    %16 = vector.broadcast %cst_13 : f32 to vector<8x32xf32>
    %17 = arith.mulf %15, %16 : vector<8x32xf32>
    %18 = vector.extract_strided_slice %17 {offsets = [0, 0], sizes = [8, 8], strides = [1, 1]} : vector<8x32xf32> to vector<8x8xf32>
    %cst_14 = arith.constant dense<0xFF800000> : vector<8xf32>
    %19 = vector.multi_reduction <maximumf>, %18, %cst_14 [1] : vector<8x8xf32> to vector<8xf32>
    %20 = vector.shape_cast %19 : vector<8xf32> to vector<8x1xf32>
    %21 = vector.broadcast %20 : vector<8x1xf32> to vector<8x8xf32>
    %22 = arith.subf %18, %21 : vector<8x8xf32>
    %23 = math.exp %22 : vector<8x8xf32>
    %cst_15 = arith.constant dense<0.000000e+00> : vector<8xf32>
    %24 = vector.multi_reduction <add>, %23, %cst_15 [1] : vector<8x8xf32> to vector<8xf32>
    %25 = vector.shape_cast %24 : vector<8xf32> to vector<8x1xf32>
    %26 = vector.broadcast %25 : vector<8x1xf32> to vector<8x8xf32>
    %27 = arith.divf %23, %26 : vector<8x8xf32>
    %28 = vector.extract_strided_slice %17 {offsets = [0, 8], sizes = [8, 8], strides = [1, 1]} : vector<8x32xf32> to vector<8x8xf32>
    %cst_16 = arith.constant dense<0xFF800000> : vector<8xf32>
    %29 = vector.multi_reduction <maximumf>, %28, %cst_16 [1] : vector<8x8xf32> to vector<8xf32>
    %30 = vector.shape_cast %29 : vector<8xf32> to vector<8x1xf32>
    %31 = vector.broadcast %30 : vector<8x1xf32> to vector<8x8xf32>
    %32 = arith.subf %28, %31 : vector<8x8xf32>
    %33 = math.exp %32 : vector<8x8xf32>
    %cst_17 = arith.constant dense<0.000000e+00> : vector<8xf32>
    %34 = vector.multi_reduction <add>, %33, %cst_17 [1] : vector<8x8xf32> to vector<8xf32>
    %35 = vector.shape_cast %34 : vector<8xf32> to vector<8x1xf32>
    %36 = vector.broadcast %35 : vector<8x1xf32> to vector<8x8xf32>
    %37 = arith.divf %33, %36 : vector<8x8xf32>
    %38 = vector.extract_strided_slice %17 {offsets = [0, 16], sizes = [8, 8], strides = [1, 1]} : vector<8x32xf32> to vector<8x8xf32>
    %cst_18 = arith.constant dense<0xFF800000> : vector<8xf32>
    %39 = vector.multi_reduction <maximumf>, %38, %cst_18 [1] : vector<8x8xf32> to vector<8xf32>
    %40 = vector.shape_cast %39 : vector<8xf32> to vector<8x1xf32>
    %41 = vector.broadcast %40 : vector<8x1xf32> to vector<8x8xf32>
    %42 = arith.subf %38, %41 : vector<8x8xf32>
    %43 = math.exp %42 : vector<8x8xf32>
    %cst_19 = arith.constant dense<0.000000e+00> : vector<8xf32>
    %44 = vector.multi_reduction <add>, %43, %cst_19 [1] : vector<8x8xf32> to vector<8xf32>
    %45 = vector.shape_cast %44 : vector<8xf32> to vector<8x1xf32>
    %46 = vector.broadcast %45 : vector<8x1xf32> to vector<8x8xf32>
    %47 = arith.divf %43, %46 : vector<8x8xf32>
    %48 = vector.extract_strided_slice %17 {offsets = [0, 24], sizes = [8, 8], strides = [1, 1]} : vector<8x32xf32> to vector<8x8xf32>
    %cst_20 = arith.constant dense<0xFF800000> : vector<8xf32>
    %49 = vector.multi_reduction <maximumf>, %48, %cst_20 [1] : vector<8x8xf32> to vector<8xf32>
    %50 = vector.shape_cast %49 : vector<8xf32> to vector<8x1xf32>
    %51 = vector.broadcast %50 : vector<8x1xf32> to vector<8x8xf32>
    %52 = arith.subf %48, %51 : vector<8x8xf32>
    %53 = math.exp %52 : vector<8x8xf32>
    %cst_21 = arith.constant dense<0.000000e+00> : vector<8xf32>
    %54 = vector.multi_reduction <add>, %53, %cst_21 [1] : vector<8x8xf32> to vector<8xf32>
    %55 = vector.shape_cast %54 : vector<8xf32> to vector<8x1xf32>
    %56 = vector.broadcast %55 : vector<8x1xf32> to vector<8x8xf32>
    %57 = arith.divf %53, %56 : vector<8x8xf32>
    %58 = tpu.concatenate %27, %37, %47, %57 in 1 : vector<8x8xf32>, vector<8x8xf32>, vector<8x8xf32>, vector<8x8xf32> -> vector<8x32xf32>
    %cst_22 = arith.constant 0.000000e+00 : f32
    %59 = vector.broadcast %cst_22 : f32 to vector<8x64xf32>
    %60 = tpu.concatenate %13, %58, %59 in 1 : vector<8x32xf32>, vector<8x32xf32>, vector<8x64xf32> -> vector<8x128xf32>
    %c0_23 = arith.constant 0 : index
    %c0_24 = arith.constant 0 : index
    %61 = vector.load %arg11[%c0_23, %c0_24] : memref<8x128xf32, #tpu.memory_space<vmem>>, vector<8x128xf32>
    tpu.vector_store %arg11[%c0_23, %c0_24], %60 {strides = array<i32>} : memref<8x128xf32, #tpu.memory_space<vmem>>, vector<8x128xf32>,
    %62 = arith.truncf %58 : vector<8x32xf32> to vector<8x32xbf16>
    %c0_25 = arith.constant 0 : index
    %c0_26 = arith.constant 0 : index
    %63 = vector.load %arg7[%c0_25, %c0_26] : memref<32x128xbf16, #tpu.memory_space<vmem>>, vector<32x128xbf16>
    %cst_27 = arith.constant dense<0.000000e+00> : vector<8x128xf32>
    %64 = tpu.matmul %62, %63, %cst_27 {dimension_numbers = #tpu.dot_dimension_numbers<[1], [0], [0], [1], [0, 0, 1, 1], [], []>} : vector<8x32xbf16>, vector<32x128xbf16>, vector<8x128xf32> -> vector<8x128xf32>
    %c0_28 = arith.constant 0 : index
    %c0_29 = arith.constant 0 : index
    %65 = vector.load %arg8[%c0_28, %c0_29] : memref<1x128xf32, #tpu.memory_space<vmem>>, vector<1x128xf32>
    %66 = vector.broadcast %65 : vector<1x128xf32> to vector<8x128xf32>
    %67 = arith.addf %64, %66 : vector<8x128xf32>
    %cst_30 = arith.constant 0.000000e+00 : f32
    %68 = vector.broadcast %cst_30 : f32 to vector<8x128xf32>
    %69 = arith.maximumf %67, %68 : vector<8x128xf32>
    %70 = arith.truncf %69 : vector<8x128xf32> to vector<8x128xbf16>
    %c0_31 = arith.constant 0 : index
    %c0_32 = arith.constant 0 : index
    %71 = vector.load %arg9[%c0_31, %c0_32] : memref<128x896xbf16, #tpu.memory_space<vmem>>, vector<128x896xbf16>
    %cst_33 = arith.constant dense<0.000000e+00> : vector<8x896xf32>
    %72 = tpu.matmul %70, %71, %cst_33 {dimension_numbers = #tpu.dot_dimension_numbers<[1], [0], [0], [1], [0, 0, 1, 1], [], []>} : vector<8x128xbf16>, vector<128x896xbf16>, vector<8x896xf32> -> vector<8x896xf32>
    %c0_34 = arith.constant 0 : index
    %c0_35 = arith.constant 0 : index
    %73 = vector.load %arg10[%c0_34, %c0_35] : memref<1x896xf32, #tpu.memory_space<vmem>>, vector<1x896xf32>
    %74 = vector.broadcast %73 : vector<1x896xf32> to vector<8x896xf32>
    %75 = arith.addf %72, %74 : vector<8x896xf32>
    %76 = arith.negf %75 : vector<8x896xf32>
    %77 = math.exp %76 : vector<8x896xf32>
    %cst_36 = arith.constant 1.000000e+00 : f32
    %78 = vector.broadcast %cst_36 : f32 to vector<8x896xf32>
    %79 = arith.addf %78, %77 : vector<8x896xf32>
    %80 = arith.divf %78, %79 : vector<8x896xf32>
    %c0_37 = arith.constant 0 : index
    %c0_38 = arith.constant 0 : index
    %81 = vector.load %arg12[%c0_37, %c0_38] : memref<8x896xf32, #tpu.memory_space<vmem>>, vector<8x896xf32>
    tpu.vector_store %arg12[%c0_37, %c0_38], %80 {strides = array<i32>} : memref<8x896xf32, #tpu.memory_space<vmem>>, vector<8x896xf32>,
    return
  }
  func.func @transform_0(%arg0: i32) -> (i32, i32) {
    %c0_i32 = arith.constant 0 : i32
    %c0_i32_0 = arith.constant 0 : i32
    return %arg0, %c0_i32 : i32, i32
  }
  func.func @transform_1(%arg0: i32) -> (i32, i32) {
    %c0_i32 = arith.constant 0 : i32
    %c0_i32_0 = arith.constant 0 : i32
    return %arg0, %c0_i32 : i32, i32
  }
  func.func @transform_2(%arg0: i32) -> (i32, i32) {
    %c0_i32 = arith.constant 0 : i32
    %c0_i32_0 = arith.constant 0 : i32
    %c0_i32_1 = arith.constant 0 : i32
    return %c0_i32, %c0_i32_0 : i32, i32
  }
  func.func @transform_3(%arg0: i32) -> (i32, i32) {
    %c0_i32 = arith.constant 0 : i32
    %c0_i32_0 = arith.constant 0 : i32
    %c0_i32_1 = arith.constant 0 : i32
    return %c0_i32, %c0_i32_0 : i32, i32
  }
  func.func @transform_4(%arg0: i32) -> (i32, i32) {
    %c0_i32 = arith.constant 0 : i32
    %c0_i32_0 = arith.constant 0 : i32
    %c0_i32_1 = arith.constant 0 : i32
    return %c0_i32, %c0_i32_0 : i32, i32
  }
  func.func @transform_5(%arg0: i32) -> (i32, i32) {
    %c0_i32 = arith.constant 0 : i32
    %c0_i32_0 = arith.constant 0 : i32
    %c0_i32_1 = arith.constant 0 : i32
    return %c0_i32, %c0_i32_0 : i32, i32
  }
  func.func @transform_6(%arg0: i32) -> (i32, i32) {
    %c0_i32 = arith.constant 0 : i32
    %c0_i32_0 = arith.constant 0 : i32
    %c0_i32_1 = arith.constant 0 : i32
    return %c0_i32, %c0_i32_0 : i32, i32
  }
  func.func @transform_7(%arg0: i32) -> (i32, i32) {
    %c0_i32 = arith.constant 0 : i32
    %c0_i32_0 = arith.constant 0 : i32
    %c0_i32_1 = arith.constant 0 : i32
    return %c0_i32, %c0_i32_0 : i32, i32
  }
  func.func @transform_8(%arg0: i32) -> (i32, i32) {
    %c0_i32 = arith.constant 0 : i32
    %c0_i32_0 = arith.constant 0 : i32
    %c0_i32_1 = arith.constant 0 : i32
    return %c0_i32, %c0_i32_0 : i32, i32
  }
  func.func @transform_9(%arg0: i32) -> (i32, i32) {
    %c0_i32 = arith.constant 0 : i32
    %c0_i32_0 = arith.constant 0 : i32
    %c0_i32_1 = arith.constant 0 : i32
    return %c0_i32, %c0_i32_0 : i32, i32
  }
  func.func @transform_10(%arg0: i32) -> (i32, i32) {
    %c0_i32 = arith.constant 0 : i32
    %c0_i32_0 = arith.constant 0 : i32
    return %arg0, %c0_i32 : i32, i32
  }
  func.func @transform_11(%arg0: i32) -> (i32, i32) {
    %c0_i32 = arith.constant 0 : i32
    %c0_i32_0 = arith.constant 0 : i32
    return %arg0, %c0_i32 : i32, i32
  }
}

</mosaic_0001>

<bundles_post_ra>
// kernel: tpu_custom_call.1
= control target key start
LH: loop header
LB: loop body
LE: loop exit
PB: predicated region body
PF: predicated region fallthrough
CT: control target
= control target key end

     0   :  { %17 = vsyncpa [#allocation3], 0  ;;  %s2303_s0 = inlined_call_operand.vmem [shape: bf16[8,784], index: 0, kind: input, shape index: {}]   ;;  %s2304_s1 = inlined_call_operand.vmem [shape: f32[8,32], index: 1, kind: input, shape index: {}]   ;;  %s2305_s2 = inlined_call_operand.hbm [shape: bf16[784,128], index: 2, kind: input, shape index: {}]   ;;  %s2306_s3 = inlined_call_operand.vmem [shape: f32[1,128], index: 3, kind: input, shape index: {}]   ;;  %s2307_s4 = inlined_call_operand.vmem [shape: bf16[128,32], index: 4, kind: input, shape index: {}]   ;;  %s2308_s5 = inlined_call_operand.vmem [shape: f32[1,32], index: 5, kind: input, shape index: {}]   ;;  %s2309_s6 = inlined_call_operand.vmem [shape: bf16[32,128], index: 6, kind: input, shape index: {}]   ;;  %s2310_s7 = inlined_call_operand.vmem [shape: f32[1,128], index: 7, kind: input, shape index: {}]   ;;  %s2311_s8 = inlined_call_operand.hbm [shape: bf16[128,896], index: 8, kind: input, shape index: {}]   ;;  %s2312_s9 = inlined_call_operand.vmem [shape: f32[1,896], index: 9, kind: input, shape index: {}]   ;;  %s2313_s10 = inlined_call_operand.hbm [shape: f32[8,128], index: 10, kind: output, shape index: {0}]   ;;  %s2314_s11 = inlined_call_operand.hbm [shape: f32[8,896], index: 11, kind: output, shape index: {1}]  }
   0x1   :  { %18 = vsyncpa [#allocation6], 0 }
   0x2   :  { %19 = vsyncpa [#allocation4], 0 }
   0x3   :  { %20 = vsyncpa [#allocation9], 0  ;;  %s2118_s17 = smov [#allocation2]  }
   0x4   :  { %s30_s18 = sshll.u32 %s2118_s17, 4  ;;  %s31_s18 = int_to_ptr.vmem [resolvable:$true] %s30_s18 }
   0x5   :  { %s2038_s19 = scalar_lea.vmem %s31_s18, 6272  ;;  %p2043_p1 = scmp.lt.s32.totalorder %s31_s18, %s31_s18 }
   0x6   :  { %p2039_p0 = scmp.ne.s32.totalorder %s31_s18, %s2038_s19  ;;  %p2044_p2 = scmp.lt.s32.totalorder %s2038_s19, %s2038_s19 }
   0x8   :  { %p2045_p3 = por %p2044_p2, %p2043_p1 }
   0xa   :  { %p2046_p4 = pnand %p2045_p3, %p2039_p0 }
   0xc   :  { %2049 = shalt.err (!%p2046_p4)
}
   0xd   :  { %s2119_s20 = smov 64   ;;  %s2120_s21 = smov 4  }
   0xe   :  { %36 = dma.hbm_to_vmem [thread:$0]  %s2305_s2, 6272, %s31_s18, [#allocation3], %s2119_s20, %s2119_s20, %s2120_s21  }
   0xf   :  { %s2121_s24 = smov [#allocation5]  }
  0x10   :  { %s52_s25 = sshll.u32 %s2121_s24, 4  ;;  %s53_s25 = int_to_ptr.vmem [resolvable:$true] %s52_s25 }
  0x11   :  { %s2058_s26 = scalar_lea.vmem %s53_s25, 7168  ;;  %p2063_p6 = scmp.lt.s32.totalorder %s53_s25, %s53_s25 }
  0x12   :  { %p2059_p5 = scmp.ne.s32.totalorder %s53_s25, %s2058_s26  ;;  %p2064_p7 = scmp.lt.s32.totalorder %s2058_s26, %s2058_s26 }
  0x14   :  { %p2065_p8 = por %p2064_p7, %p2063_p6 }
  0x16   :  { %p2066_p9 = pnand %p2065_p8, %p2059_p5 }
  0x18   :  { %2069 = shalt.err (!%p2066_p9)
}
  0x19   :  { %s2122_s27 = smov 448   ;;  %s2123_s28 = smov 28  }
  0x1a   :  { %58 = dma.hbm_to_vmem [thread:$0]  %s2311_s8, 7168, %s53_s25, [#allocation6], %s2122_s27, %s2122_s27, %s2123_s28  }
  0x1b   :  { %2110 = dma.done.wait [#allocation3], 6272  }
  0x1c   :  { %2111 = vsyncadd [#allocation3], 4294961024 }
  0x1d   :  { %2112 = dma.done.wait [#allocation6], 7168  }
  0x1e   :  { %2113 = vsyncadd [#allocation6], 4294960128  ;;  %v1840_v0 = vld [vmem:[#allocation2 + $0x78] sm:$0xff]   ;;  %v1844_v4 = vld [vmem:[#allocation2 + $0x70] sm:$0xff]   ;;  %v2124_v43 = vmov 0.0   ;;  %vm2125_vm0 = vmmov 0  }
  0x1f   :  { %v1841_v1 = vld [vmem:[#allocation2 + $0x38] sm:$0xff]   ;;  %1682 = vmatprep.subr.bf16.mxu0 %v1840_v0  ;;  %v1845_v5 = vld [vmem:[#allocation2 + $0x30] sm:$0xff]   ;;  %v1848_v8 = vld [vmem:[#allocation2 + $0x68] sm:$0xff]   ;;  %vm495_vm1 = vcmask 130048   ;;  %vm819_vm2 = vcmask 261312   ;;  %vm787_vm3 = vcmask 130112  }
  0x20   :  { %v1842_v2 = vld [vmem:[#allocation2 + $0xf8] sm:$0xff]   ;;  %1683 = vmatpush3.bf16.msra.mxu0 %v1841_v1  ;;  %v1846_v6 = vld [vmem:[#allocation2 + $0xf0] sm:$0xff]   ;;  %v1849_v9 = vld [vmem:[#allocation2 + $0x28] sm:$0xff]   ;;  %vm803_vm4 = vcmask 195712   ;;  %vm775_vm5 = vcmask 64512   ;;  %s2128_s16 = smov 104  }
  0x21   :  { %v1843_v3 = vld [vmem:[#allocation2 + $0xb8] sm:$0xff]   ;;  %1704 = vmatprep.subr.bf16.mxu1 %v1842_v2  ;;  %1684 = vmatprep.subr.bf16.mxu0 %v1844_v4  ;;  %v1847_v7 = vld [vmem:[#allocation2 + $0xb0] sm:$0xff]   ;;  %v1850_v10 = vld [vmem:[#allocation2 + $0xe8] sm:$0xff]   ;;  %vm837_vm6 = vcmask 195584   ;;  %vm843_vm7 = vcmask 261120   ;;  %vm845_vm8 = vcmask 523264  }
  0x22   :  { %1705 = vmatpush3.bf16.msra.mxu1 %v1843_v3  ;;  %v1851_v11 = vld [vmem:[#allocation2 + $0xa8] sm:$0xff]   ;;  %v1852_v12 = vld [vmem:[#allocation2 + $0x60] sm:$0xff]   ;;  %v1856_v16 = vld [vmem:[#allocation2 + $0x58] sm:$0xff]  }
  0x23   :  { %1706 = vmatprep.subr.bf16.mxu1 %v1846_v6  ;;  %v1853_v13 = vld [vmem:[#allocation2 + $0x20] sm:$0xff]   ;;  %v1857_v17 = vld [vmem:[#allocation2 + $0x18] sm:$0xff]   ;;  %v1860_v20 = vld [vmem:[#allocation2 + $0x50] sm:$0xff]  }
  0x24   :  { %1685 = vmatpush3.bf16.msra.mxu0 %v1845_v5  ;;  %v1854_v14 = vld [vmem:[#allocation2 + $0xe0] sm:$0xff]   ;;  %v1858_v18 = vld [vmem:[#allocation2 + $0xd8] sm:$0xff]   ;;  %v1861_v21 = vld [vmem:[#allocation2 + $0x10] sm:$0xff]  }
  0x25   :  { %1686 = vmatprep.subr.bf16.mxu0 %v1848_v8  ;;  %v1855_v15 = vld [vmem:[#allocation2 + $0xa0] sm:$0xff]   ;;  %v1859_v19 = vld [vmem:[#allocation2 + $0x98] sm:$0xff]   ;;  %v1862_v22 = vld [vmem:[#allocation2 + $0xd0] sm:$0xff]  }
  0x26   :  { %1707 = vmatpush3.bf16.msra.mxu1 %v1847_v7  ;;  %v1863_v23 = vld [vmem:[#allocation2 + $0x90] sm:$0xff]   ;;  %v1864_v24 = vld [vmem:[#allocation2 + $0x48] sm:$0xff]   ;;  %v1868_v28 = vld [vmem:[#allocation2 + $0x40] sm:$0xff]  }
  0x27   :  { %1708 = vmatprep.subr.bf16.mxu1 %v1850_v10  ;;  %v1865_v25 = vld [vmem:[#allocation2 + $0x8] sm:$0xff]   ;;  %v1869_v29 = vld [vmem:[#allocation2] sm:$0xff]   ;;  %v1874_v35 = vld [vmem:[#allocation2 + $0x178] sm:$0xff]  }
  0x28   :  { %1687 = vmatpush3.bf16.msra.mxu0 %v1849_v9  ;;  %v1866_v26 = vld [vmem:[#allocation2 + $0xc8] sm:$0xff]   ;;  %v1870_v30 = vld [vmem:[#allocation2 + $0xc0] sm:$0xff]   ;;  %v1877_v39 = vld [vmem:[#allocation2 + $0x138] sm:$0xff]  }
  0x29   :  { %1688 = vmatprep.subr.bf16.mxu0 %v1852_v12  ;;  %v1867_v27 = vld [vmem:[#allocation2 + $0x88] sm:$0xff]   ;;  %v68_v31 = vld [vmem:[%s2303_s0] sm:$0xff]  ;;  %v1878_v40 = vld [vmem:[#allocation2 + $0x170] sm:$0xff]  }
  0x2a   :  { %1709 = vmatpush3.bf16.msra.mxu1 %v1851_v11  ;;  %v1549_v32 = vcombine.low %v68_v31, %v68_v31  ;;  %v1550_v33 = vcombine.high %v68_v31, %v68_v31  ;;  %v1873_v34 = vld [vmem:[#allocation2 + $0x80] sm:$0xff]   ;;  %v69_v36 = vld [vmem:[%s2303_s0 + $0x8] sm:$0xff]  ;;  %v1879_v41 = vld [vmem:[#allocation2 + $0x130] sm:$0xff]  }
  0x2b   :  { %1710 = vmatprep.subr.bf16.mxu1 %v1854_v14  ;;  %v1551_v37 = vcombine.low %v69_v36, %v69_v36  ;;  %v1552_v38 = vcombine.high %v69_v36, %v69_v36  ;;  %v1880_v42 = vld [vmem:[#allocation2 + $0x168] sm:$0xff]   ;;  %v1882_v45 = vld [vmem:[#allocation2 + $0x160] sm:$0xff]   ;;  %v1884_v47 = vld [vmem:[#allocation2 + $0x158] sm:$0xff]  }
  0x2c   :  { %1689 = vmatpush3.bf16.msra.mxu0 %v1853_v13  ;;  %531 = vmatprep.mubr.bf16.mxu0 %v1550_v33  ;;  %v1881_v44 = vld [vmem:[#allocation2 + $0x128] sm:$0xff]   ;;  %v1883_v46 = vld [vmem:[#allocation2 + $0x120] sm:$0xff]   ;;  %v1885_v48 = vld [vmem:[#allocation2 + $0x118] sm:$0xff]  }
  0x2d   :  { %1690 = vmatprep.subr.bf16.mxu0 %v1856_v16  ;;  %571 = vmatprep.mubr.bf16.mxu1 %v1552_v38  ;;  %v1886_v49 = vld [vmem:[#allocation2 + $0x150] sm:$0xff]   ;;  %v1892_v50 = vld [vmem:[#allocation2 + $0x180] sm:$0xff]   ;;  %v1895_v54 = vld [vmem:[%s2303_s0 + $0x18] ss:$0 sps:$4 sm:$0xff]  }
  0x2e   :  { %1711 = vmatpush3.bf16.msra.mxu1 %v1855_v15  ;;  %v70_v51 = vld [vmem:[%s2303_s0 + $0x10] sm:$0xff]  ;;  %v1888_v55 = vld [vmem:[#allocation2 + $0x148] sm:$0xff]   ;;  %v1890_v57 = vld [vmem:[#allocation2 + $0x140] sm:$0xff]  }
  0x2f   :  { %1712 = vmatprep.subr.bf16.mxu1 %v1858_v18  ;;  %v1887_v52 = vld [vmem:[#allocation2 + $0x110] sm:$0xff]   ;;  %v1554_v53 = vcombine.high %v70_v51, %v70_v51  ;;  %v1889_v56 = vld [vmem:[#allocation2 + $0x108] sm:$0xff]   ;;  %v1891_v58 = vld [vmem:[#allocation2 + $0x100] sm:$0xff]   ;;  %v1553_v59 = vcombine.low %v70_v51, %v70_v51 }
  0x30   :  { %1691 = vmatpush3.bf16.msra.mxu0 %v1857_v17  ;;  %v1896_v60 = vld [vmem:[%s2307_s4 + $0x38] sm:$0xff]   ;;  %v1897_v61 = vld [vmem:[%s2307_s4 + $0x30] sm:$0xff]   ;;  %v1898_v62 = vld [vmem:[%s2307_s4 + $0x28] sm:$0xff]  }
  0x31   :  { %1692 = vmatprep.subr.bf16.mxu0 %v1860_v20  ;;  %v1899_v63 = vld [vmem:[%s2307_s4 + $0x20] sm:$0xff]   ;;  %v1900_v0 = vld [vmem:[%s2307_s4 + $0x18] sm:$0xff]   ;;  %v1901_v1 = vld [vmem:[%s2307_s4 + $0x10] sm:$0xff]  }
  0x32   :  { %1713 = vmatpush3.bf16.msra.mxu1 %v1859_v19  ;;  %v1902_v2 = vld [vmem:[%s2307_s4 + $0x8] sm:$0xff]   ;;  %v1903_v3 = vld [vmem:[%s2307_s4] sm:$0xff]  }
  0x33   :  { %1714 = vmatprep.subr.bf16.mxu1 %v1862_v22  ;;  %v1548_v17 = vld [vmem:[%s2306_s3] ss:$0 sm:$0xff] }
  0x34   :  { %1693 = vmatpush3.bf16.msra.mxu0 %v1861_v21 }
  0x35   :  { %1694 = vmatprep.subr.bf16.mxu0 %v1864_v24 }
  0x36   :  { %1715 = vmatpush3.bf16.msra.mxu1 %v1863_v23 }
  0x37   :  { %1716 = vmatprep.subr.bf16.mxu1 %v1866_v26 }
  0x38   :  { %1695 = vmatpush3.bf16.msra.mxu0 %v1865_v25 }
  0x39   :  { %1696 = vmatprep.subr.bf16.mxu0 %v1868_v28 }
  0x3a   :  { %1717 = vmatpush3.bf16.msra.mxu1 %v1867_v27 }
  0x3b   :  { %1718 = vmatprep.subr.bf16.mxu1 %v1870_v30  ;;  %v1606_v30 = vld [vmem:[%s2308_s5] ss:$0 sm:$0xff]  ;;  %s2127_s5 = smov 112  }
  0x3c   :  { %1697 = vmatpush3.bf16.msra.mxu0 %v1869_v29 }
  0x3d   :  { %1726 = vmatprep.subr.bf16.mxu0 %v1874_v35 }
  0x3e   :  { %1719 = vmatpush3.bf16.msra.mxu1 %v1873_v34 }
  0x3f   :  { %532 = vmatmul.mubr.bf16.vlgmr.msra.gmra.mxu0 %v1549_v32  ;;  %1771 = vmatprep.subr.bf16.mxu1 %v2124_v43  ;;  %v772_v32 = vld [vmem:[%s2304_s1] sm:$0xff]  ;;  %s2126_s1 = smov 120  }
  0x40   :  { %1727 = vmatpush3.bf16.msra.mxu0 %v1877_v39  ;;  %611 = vmatprep.mubr.bf16.mxu0 %v1554_v53 }
  0x41   :  { %572 = vmatmul.mubr.bf16.vlgmr.msra.gmra.mxu1 %v1551_v37  ;;  %1728 = vmatprep.subr.bf16.mxu0 %v1878_v40 }
  0x42   :  { %1773 = vmatprep.mubr.msk.bf16.mxu1 %vm2125_vm0, %v2124_v43  ;;  %1772 = vmatpush3.bf16.msra.mxu1 %v1892_v50 }
  0x43   :  { %1777 = vmatprep.subr.bf16.mxu1 %v2124_v43 }
  0x44   :  { %1729 = vmatpush3.bf16.msra.mxu0 %v1879_v41 }
  0x45   :  { %1730 = vmatprep.subr.bf16.mxu0 %v1880_v42 }
  0x48   :  { %1731 = vmatpush3.bf16.msra.mxu0 %v1881_v44 }
  0x49   :  { %1732 = vmatprep.subr.bf16.mxu0 %v1882_v45  ;;  %1774 = vmatmul.mubr.msk.bf16.vlgmr.msra.gmra.mxu1 %vm495_vm1, %v1895_v54 }
  0x4a   :  { %1793 = vmatprep.mubr.msk.bf16.mxu1 %vm2125_vm0, %v2124_v43  ;;  %1778 = vmatpush3.bf16.msra.mxu1 %v1896_v60 }
  0x4b   :  { %1779 = vmatprep.subr.bf16.mxu1 %v2124_v43 }
  0x4c   :  { %1733 = vmatpush3.bf16.msra.mxu0 %v1883_v46 }
  0x4d   :  { %1734 = vmatprep.subr.bf16.mxu0 %v1884_v47 }
  0x4e   :  { %1780 = vmatpush3.bf16.msra.mxu1 %v1897_v61 }
  0x4f   :  { %1781 = vmatprep.subr.bf16.mxu1 %v2124_v43 }
  0x50   :  { %1735 = vmatpush3.bf16.msra.mxu0 %v1885_v48 }
  0x51   :  { %1736 = vmatprep.subr.bf16.mxu0 %v1886_v49 }
  0x52   :  { %1782 = vmatpush3.bf16.msra.mxu1 %v1898_v62 }
  0x53   :  { %1783 = vmatprep.subr.bf16.mxu1 %v2124_v43 }
  0x54   :  { %1737 = vmatpush3.bf16.msra.mxu0 %v1887_v52 }
  0x55   :  { %1738 = vmatprep.subr.bf16.mxu0 %v1888_v55 }
  0x56   :  { %1784 = vmatpush3.bf16.msra.mxu1 %v1899_v63 }
  0x57   :  { %1785 = vmatprep.subr.bf16.mxu1 %v2124_v43 }
  0x58   :  { %1739 = vmatpush3.bf16.msra.mxu0 %v1889_v56 }
  0x59   :  { %1740 = vmatprep.subr.bf16.mxu0 %v1890_v57 }
  0x5a   :  { %1786 = vmatpush3.bf16.msra.mxu1 %v1900_v0 }
  0x5b   :  { %1787 = vmatprep.subr.bf16.mxu1 %v2124_v43 }
  0x5c   :  { %1741 = vmatpush3.bf16.msra.mxu0 %v1891_v58 }
  0x5d   :  { %1797 = vmatprep.subr.bf16.mxu0 %v2124_v43 }
  0x5e   :  { %1788 = vmatpush3.bf16.msra.mxu1 %v1901_v1 }
  0x5f   :  { %612 = vmatmul.mubr.bf16.vlgmr.msra.gmra.mxu0 %v1553_v59  ;;  %1789 = vmatprep.subr.bf16.mxu1 %v2124_v43 }
  0x60   :  { %1801 = vmatprep.mubr.msk.bf16.mxu0 %vm2125_vm0, %v2124_v43 }
  0x62   :  { %1790 = vmatpush3.bf16.msra.mxu1 %v1902_v2 }
  0x63   :  { %1791 = vmatprep.subr.bf16.mxu1 %v2124_v43 }
  0x66   :  { %1792 = vmatpush3.bf16.msra.mxu1 %v1903_v3  ;;  %v1904_v3 = vld [vmem:[%s2309_s6 + $0x8] sm:$0xff]  }
  0x67   :  { %1798 = vmatpush3.bf16.msra.mxu0 %v1904_v3  ;;  %v1957_v3 = vld [vmem:[#allocation5 + $0x1a0] ss:$28 sps:$4 sm:$0xff]  }
  0x68   :  { %1799 = vmatprep.subr.bf16.mxu0 %v2124_v43 }
  0xff   :  { %v1698_v4 = vpop.f32.mrf.mxu0 }
 0x101   :  { %v1699_v5 = vpop.f32.mrf.mxu0  ;;  %v1720_v6 = vpop.f32.mrf.mxu1 }
 0x102   :  { %v1700_v16 = vadd.f32 %v1699_v5, %v1698_v4  ;;  %v1905_v4 = vld [vmem:[%s2309_s6] sm:$0xff]   ;;  %s2129_s6 = smov 32  }
 0x103   :  { %v1701_v7 = vpop.f32.mrf.mxu0  ;;  %v1721_v8 = vpop.f32.mrf.mxu1  ;;  %1800 = vmatpush3.bf16.msra.mxu0 %v1905_v4 }
 0x104   :  { %v534_v18 = vadd.f32 %v1700_v16, %v1548_v17  ;;  %v1722_v19 = vadd.f32 %v1721_v8, %v1720_v6  ;;  %v1923_v17 = vld [vmem:[#allocation5 + $0x124] ss:$28 sps:$4 sm:$0xff]  }
 0x105   :  { %v1702_v9 = vpop.f32.mrf.mxu0  ;;  %v1723_v10 = vpop.f32.mrf.mxu1 }
 0x106   :  { %v574_v22 = vadd.f32 %v1722_v19, %v534_v18  ;;  %v1908_v9 = vld [vmem:[#allocation5 + $0x18c] ss:$28 sps:$4 sm:$0xff]  }
 0x107   :  { %v1724_v11 = vpop.f32.mrf.mxu1  ;;  %v1909_v10 = vld [vmem:[#allocation5 + $0x190] ss:$28 sps:$4 sm:$0xff]   ;;  %1306 = vmatprep.subr.bf16.mxu0 %v1908_v9  ;;  %v1962_v9 = vld [vmem:[#allocation5 + $0x128] ss:$28 sps:$4 sm:$0xff]  }
 0x108   :  { %v1911_v11 = vld [vmem:[#allocation5 + $0x194] ss:$28 sps:$4 sm:$0xff]  }
 0x109   :  { %v653_v12 = vpop.f32.mrf.mxu1  ;;  %1347 = vmatprep.subr.bf16.mxu1 %v1911_v11  ;;  %v1968_v11 = vld [vmem:[#allocation5 + $0xf4] ss:$28 sps:$4 sm:$0xff]  }
 0x10b   :  { %v1775_v13 = vpop.f32.mrf.mxu1 }
 0x10d   :  { %v656_v14 = vpop.f32.mrf.mxu1 }
 0x10f   :  { %v1776_v15 = vpop.f32.mrf.mxu1 }
 0x110   :  { %v1915_v15 = vld [vmem:[#allocation5 + $0x158] ss:$28 sps:$4 sm:$0xff]  }
 0x11f   :  { %v1742_v20 = vpop.f32.mrf.mxu0 }
 0x121   :  { %v1743_v21 = vpop.f32.mrf.mxu0 }
 0x122   :  { %v1744_v23 = vadd.f32 %v1743_v21, %v1742_v20  ;;  %v1921_v21 = vld [vmem:[#allocation5 + $0x120] ss:$28 sps:$4 sm:$0xff]  }
 0x123   :  { %v1745_v24 = vpop.f32.mrf.mxu0 }
 0x124   :  { %v614_v25 = vadd.f32 %v1744_v23, %v574_v22  ;;  %v1929_v23 = vld [vmem:[#allocation5 + $0xec] ss:$28 sps:$4 sm:$0xff]  }
 0x125   :  { %v1746_v26 = vpop.f32.mrf.mxu0 }
 0x126   :  { %v654_v27 = vadd.f32 %v653_v12, %v614_v25  ;;  %v1917_v12 = vld [vmem:[#allocation5 + $0x15c] ss:$28 sps:$4 sm:$0xff]  }
 0x128   :  { %v659_v28 = vmax.f32 %v654_v27, 0.0 }
 0x12a   :  { %v660_v29 = vpack.c.bf16 %v659_v28, %v659_v28  ;;  %v1906_v28 = vld [vmem:[#allocation5 + $0x188] ss:$28 sps:$4 sm:$0xff]  }
 0x12c   :  { %1794 = vmatmul.mubr.bf16.vlgmr.msra.gmra.mxu1 %v660_v29  ;;  %v1927_v29 = vld [vmem:[#allocation5 + $0xe8] ss:$28 sps:$4 sm:$0xff]  }
 0x12d   :  { %1348 = vmatpush1.bf16.msra.mxu1 %v1909_v10  ;;  %v1965_v10 = vld [vmem:[#allocation5 + $0x130] ss:$28 sps:$4 sm:$0xff]  }
 0x12e   :  { %1349 = vmatprep.subr.bf16.mxu1 %v1917_v12  ;;  %v1966_v12 = vld [vmem:[#allocation5 + $0xf0] ss:$28 sps:$4 sm:$0xff]  }
 0x131   :  { %1350 = vmatpush1.bf16.msra.mxu1 %v1915_v15  ;;  %v1970_v15 = vld [vmem:[#allocation5 + $0xb8] ss:$28 sps:$4 sm:$0xff]  }
 0x132   :  { %1351 = vmatprep.subr.bf16.mxu1 %v1923_v17  ;;  %v1976_v17 = vld [vmem:[#allocation5 + $0x84] ss:$28 sps:$4 sm:$0xff]  }
 0x135   :  { %1352 = vmatpush1.bf16.msra.mxu1 %v1921_v21  ;;  %v1978_v21 = vld [vmem:[#allocation5 + $0x48] ss:$28 sps:$4 sm:$0xff]  }
 0x136   :  { %1353 = vmatprep.subr.bf16.mxu1 %v1929_v23  ;;  %v1984_v23 = vld [vmem:[#allocation5 + $0x14] ss:$28 sps:$4 sm:$0xff]  }
 0x139   :  { %1354 = vmatpush1.bf16.msra.mxu1 %v1927_v29 }
 0x1ec   :  { %v766_v31 = vpop.f32.mrf.mxu1 }
 0x1ed   :  { %v2261_v33 = vadd.f32 %v1606_v30, %v766_v31  ;;  %v1914_v31 = vld [vmem:[#allocation5 + $0x154] ss:$28 sps:$4 sm:$0xff]  }
 0x1ee   :  { %v1795_v34 = vpop.f32.mrf.mxu1 }
 0x1ef   :  { %v773_v35 = vadd.f32 %v772_v32, %v2261_v33  ;;  %v1935_v32 = vld [vmem:[#allocation5 + $0xb4] ss:$28 sps:$4 sm:$0xff]  }
 0x1f0   :  { %v769_v36 = vpop.f32.mrf.mxu1  ;;  %v1912_v34 = vld [vmem:[#allocation5 + $0x150] ss:$28 sps:$4 sm:$0xff]   ;;  %1355 = vmatprep.subr.bf16.mxu1 %v1935_v32 }
 0x1f1   :  { %v774_v37 = vmul.f32 2.0, %v773_v35  ;;  %v1933_v35 = vld [vmem:[#allocation5 + $0xb0] ss:$28 sps:$4 sm:$0xff]   ;;  %v1920_v36 = vld [vmem:[#allocation5 + $0x11c] ss:$28 sps:$4 sm:$0xff]  }
 0x1f2   :  { %v1796_v38 = vpop.f32.mrf.mxu1  ;;  %1356 = vmatpush1.bf16.msra.mxu1 %v1933_v35 }
 0x1f3   :  { %v820_v39 = vsel %vm819_vm2, %v774_v37, -inf  ;;  %v788_v40 = vsel %vm787_vm3, %v774_v37, -inf  ;;  %v804_v41 = vsel %vm803_vm4, %v774_v37, -inf  ;;  %v776_v42 = vsel %vm775_vm5, %v774_v37, -inf  ;;  %v1918_v38 = vld [vmem:[#allocation5 + $0x118] ss:$28 sps:$4 sm:$0xff]  }
 0x1f4   :  { %821 = vmax.xlane.f32.xlu1 %v820_v39  ;;  %789 = vmax.xlane.f32.xlu0 %v788_v40  ;;  %v1939_v39 = vld [vmem:[#allocation5 + $0x78] ss:$28 sps:$4 sm:$0xff]   ;;  %v1926_v40 = vld [vmem:[#allocation5 + $0xe4] ss:$28 sps:$4 sm:$0xff]  }
 0x1f8   :  { %805 = vmax.xlane.f32.xlu0 %v804_v41  ;;  %777 = vmax.xlane.f32.xlu1 %v776_v42  ;;  %v1947_v41 = vld [vmem:[#allocation5 + $0x44] ss:$28 sps:$4 sm:$0xff]  }
 0x1f9   :  { %v1924_v42 = vld [vmem:[#allocation5 + $0xe0] ss:$28 sps:$4 sm:$0xff]  }
 0x27d   :  { %v790_v44 = vpop.xlane.xlu0 %789  ;;  %v822_v46 = vpop.xlane.xlu1 %821 }
 0x27e   :  { %v791_v45 = vsub.f32 %v774_v37, %v790_v44  ;;  %v823_v49 = vsub.f32 %v774_v37, %v822_v46  ;;  %v1945_v44 = vld [vmem:[#allocation5 + $0x40] ss:$28 sps:$4 sm:$0xff]   ;;  %v1930_v46 = vld [vmem:[#allocation5 + $0xa8] ss:$28 sps:$4 sm:$0xff]  }
 0x280   :  { %v792_v47 = vmul.f32 1.442695, %v791_v45  ;;  %v824_v52 = vmul.f32 1.442695, %v823_v49  ;;  %v1932_v45 = vld [vmem:[#allocation5 + $0xac] ss:$28 sps:$4 sm:$0xff]  }
 0x281   :  { %v806_v48 = vpop.xlane.xlu0 %805  ;;  %v778_v56 = vpop.xlane.xlu1 %777  ;;  %v1944_v49 = vld [vmem:[#allocation5 + $0x3c] ss:$28 sps:$4 sm:$0xff]  }
 0x282   :  { %v807_v50 = vsub.f32 %v774_v37, %v806_v48  ;;  %1986 = vpow2.f32 %v792_v47  ;;  %v779_v57 = vsub.f32 %v774_v37, %v778_v56  ;;  %v1941_v37 = vld [vmem:[#allocation5 + $0x7c] ss:$28 sps:$4 sm:$0xff]   ;;  %v1938_v47 = vld [vmem:[#allocation5 + $0x74] ss:$28 sps:$4 sm:$0xff]   ;;  %v2130_v56 = vmov 0  }
 0x283   :  { %1357 = vmatprep.subr.bf16.mxu1 %v1941_v37  ;;  %v1936_v48 = vld [vmem:[#allocation5 + $0x70] ss:$28 sps:$4 sm:$0xff]   ;;  %1379 = vmatprep.mubr.bf16.mxu1 %v2130_v56 }
 0x284   :  { %v808_v51 = vmul.f32 1.442695, %v807_v50  ;;  %v780_v58 = vmul.f32 1.442695, %v779_v57  ;;  %1358 = vmatpush1.bf16.msra.mxu1 %v1939_v39  ;;  %v1942_v50 = vld [vmem:[#allocation5 + $0x38] ss:$28 sps:$4 sm:$0xff]  }
 0x285   :  { %1359 = vmatprep.subr.bf16.mxu1 %v1947_v41 }
 0x286   :  { %1988 = vpow2.f32 %v808_v51  ;;  %v1950_v51 = vld [vmem:[#allocation5 + $0x4] ss:$28 sps:$4 sm:$0xff]  }
 0x287   :  { %1990 = vpow2.f32 %v824_v52  ;;  %v1953_v52 = vld [vmem:[#allocation5 + $0xc] ss:$28 sps:$4 sm:$0xff]  }
 0x288   :  { %1992 = vpow2.f32 %v780_v58  ;;  %1360 = vmatpush1.bf16.msra.mxu1 %v1945_v44 }
 0x289   :  { %1361 = vmatprep.subr.bf16.mxu1 %v1953_v52 }
 0x28f   :  { %v1987_v53 = vpop.eup %1986 }
 0x290   :  { %795 = vrot.lane.b32.xlu0 %v1987_v53, %s2126_s1 }
 0x293   :  { %v1989_v54 = vpop.eup %1988 }
 0x294   :  { %811 = vrot.lane.b32.xlu1 %v1989_v54, %s2127_s5  ;;  %v1991_v55 = vpop.eup %1990 }
 0x295   :  { %v1993_v59 = vpop.eup %1992 }
 0x296   :  { %v782_v60 = vsel %vm775_vm5, %v1993_v59, 0.0 }
 0x298   :  { %827 = vrot.lane.b32.xlu1 %v1991_v55, %s2128_s16 }
 0x2bc   :  { %783 = vadd.xlane.f32.xlu1 %v782_v60  ;;  %v1615_v60 = vld [vmem:[%s2310_s7] ss:$0 sm:$0xff]  ;;  %s2131_s7 = smov [#allocation7]  }
 0x2bd   :  { %s1524_s22 = sshll.u32 %s2131_s7, 4  ;;  %s1525_s22 = int_to_ptr.vmem [resolvable:$true] %s1524_s22 }
 0x2be   :  { %s2070_s23 = scalar_lea.vmem %s1525_s22, 128  ;;  %p2075_p11 = scmp.lt.s32.totalorder %s1525_s22, %s1525_s22 }
 0x2bf   :  { %p2071_p10 = scmp.ne.s32.totalorder %s1525_s22, %s2070_s23  ;;  %p2076_p12 = scmp.lt.s32.totalorder %s2070_s23, %s2070_s23 }
 0x2c1   :  { %p2077_p13 = por %p2076_p12, %p2075_p11 }
 0x2c3   :  { %p2078_p0 = pnand %p2077_p13, %p2071_p10 }
 0x302   :  { %v796_v61 = vpop.permute.xlu0 %795 }
 0x303   :  { %v798_v62 = vsel %vm775_vm5, %v796_v61, 0.0 }
 0x304   :  { %799 = vadd.xlane.f32.xlu0 %v798_v62 }
 0x306   :  { %v812_v63 = vpop.permute.xlu1 %811 }
 0x307   :  { %v814_v0 = vsel %vm775_vm5, %v812_v63, 0.0 }
 0x308   :  { %815 = vadd.xlane.f32.xlu0 %v814_v0 }
 0x30a   :  { %v828_v1 = vpop.permute.xlu1 %827 }
 0x30b   :  { %v830_v2 = vsel %vm775_vm5, %v828_v1, 0.0 }
 0x30c   :  { %831 = vadd.xlane.f32.xlu0 %v830_v2  ;;  %v1954_v2 = vld [vmem:[#allocation5 + $0x198] ss:$28 sps:$4 sm:$0xff]  }
 0x345   :  { %v784_v6 = vpop.xlane.xlu1 %783 }
 0x38d   :  { %v800_v5 = vpop.xlane.xlu0 %799 }
 0x38e   :  { %1994 = vrcp.f32 %v800_v5  ;;  %v1960_v5 = vld [vmem:[#allocation5 + $0x164] ss:$28 sps:$4 sm:$0xff]  }
 0x38f   :  { %1996 = vrcp.f32 %v784_v6 }
 0x391   :  { %v816_v7 = vpop.xlane.xlu0 %815 }
 0x392   :  { %1998 = vrcp.f32 %v816_v7  ;;  %v1961_v7 = vld [vmem:[#allocation5 + $0x168] ss:$28 sps:$4 sm:$0xff]  }
 0x395   :  { %v832_v8 = vpop.xlane.xlu0 %831 }
 0x396   :  { %2000 = vrcp.f32 %v832_v8  ;;  %v1964_v8 = vld [vmem:[#allocation5 + $0x12c] ss:$28 sps:$4 sm:$0xff]  }
 0x39b   :  { %v1995_v13 = vpop.eup %1994 }
 0x39c   :  { %v1997_v14 = vpop.eup %1996  ;;  %v802_v18 = vmul.f32 %v1995_v13, %v1987_v53  ;;  %v1948_v53 = vld [vmem:[#allocation5] ss:$28 sps:$4 sm:$0xff]   ;;  %v1969_v13 = vld [vmem:[#allocation5 + $0xf8] ss:$28 sps:$4 sm:$0xff]  }
 0x39d   :  { %v786_v20 = vmul.f32 %v1997_v14, %v1993_v59  ;;  %v1972_v14 = vld [vmem:[#allocation5 + $0xbc] ss:$28 sps:$4 sm:$0xff]  }
 0x39f   :  { %v1999_v16 = vpop.eup %1998  ;;  %v835_v25 = vsel %vm775_vm5, %v786_v20, %v802_v18  ;;  %v1974_v18 = vld [vmem:[#allocation5 + $0x80] ss:$28 sps:$4 sm:$0xff]   ;;  %v1980_v20 = vld [vmem:[#allocation5 + $0x4c] ss:$28 sps:$4 sm:$0xff]  }
 0x3a0   :  { %v818_v19 = vmul.f32 %v1999_v16, %v1989_v54  ;;  %v1951_v54 = vld [vmem:[#allocation5 + $0x8] ss:$28 sps:$4 sm:$0xff]   ;;  %v1973_v16 = vld [vmem:[#allocation5 + $0xc0] ss:$28 sps:$4 sm:$0xff]  }
 0x3a1   :  { %1362 = vmatpush1.bf16.msra.mxu1 %v1951_v54 }
 0x3a2   :  { %v836_v26 = vsel %vm495_vm1, %v835_v25, %v818_v19  ;;  %1805 = vmatprep.subr.bf16.mxu1 %v2124_v43  ;;  %v1977_v19 = vld [vmem:[#allocation5 + $0x88] ss:$28 sps:$4 sm:$0xff]   ;;  %v1985_v25 = vld [vmem:[#allocation5 + $0x18] ss:$28 sps:$4 sm:$0xff]  }
 0x3a3   :  { %v2001_v22 = vpop.eup %2000 }
 0x3a4   :  { %v834_v24 = vmul.f32 %v2001_v22, %v1991_v55  ;;  %v1956_v55 = vld [vmem:[#allocation5 + $0x19c] ss:$28 sps:$4 sm:$0xff]   ;;  %v1981_v22 = vld [vmem:[#allocation5 + $0x50] ss:$28 sps:$4 sm:$0xff]  }
 0x3a6   :  { %v838_v27 = vsel %vm837_vm6, %v836_v26, %v834_v24  ;;  %v1982_v24 = vld [vmem:[#allocation5 + $0x10] ss:$28 sps:$4 sm:$0xff]  }
 0x3a7   :  { %840 = vrot.lane.b32.xlu1 %v838_v27, %s2129_s6  ;;  %v848_v30 = vpack.c.bf16 %v838_v27, %v838_v27 }
 0x3a9   :  { %1802 = vmatmul.mubr.msk.bf16.vlgmr.msra.gmra.mxu0 %vm843_vm7, %v848_v30 }
 0x3aa   :  { %1307 = vmatpush1.bf16.msra.mxu0 %v1906_v28  ;;  %1338 = vmatprep.mubr.bf16.mxu0 %v2130_v56 }
 0x3ab   :  { %1308 = vmatprep.subr.bf16.mxu0 %v1914_v31 }
 0x3ae   :  { %1309 = vmatpush1.bf16.msra.mxu0 %v1912_v34 }
 0x3af   :  { %1310 = vmatprep.subr.bf16.mxu0 %v1920_v36 }
 0x3b2   :  { %1311 = vmatpush1.bf16.msra.mxu0 %v1918_v38 }
 0x3b3   :  { %1312 = vmatprep.subr.bf16.mxu0 %v1926_v40 }
 0x3b6   :  { %1313 = vmatpush1.bf16.msra.mxu0 %v1924_v42 }
 0x3b7   :  { %1314 = vmatprep.subr.bf16.mxu0 %v1932_v45 }
 0x3ba   :  { %1315 = vmatpush1.bf16.msra.mxu0 %v1930_v46 }
 0x3bb   :  { %1316 = vmatprep.subr.bf16.mxu0 %v1938_v47 }
 0x3be   :  { %1317 = vmatpush1.bf16.msra.mxu0 %v1936_v48 }
 0x3bf   :  { %1318 = vmatprep.subr.bf16.mxu0 %v1944_v49 }
 0x3c2   :  { %1319 = vmatpush1.bf16.msra.mxu0 %v1942_v50 }
 0x3c3   :  { %1320 = vmatprep.subr.bf16.mxu0 %v1950_v51 }
 0x3c6   :  { %1321 = vmatpush1.bf16.msra.mxu0 %v1948_v53 }
 0x3c7   :  { %1388 = vmatprep.subr.bf16.mxu0 %v1956_v55 }
 0x419   :  { %v841_v57 = vpop.permute.xlu1 %840 }
 0x41a   :  { %v844_v58 = vsel %vm843_vm7, %v2261_v33, %v841_v57  ;;  %v1958_v33 = vld [vmem:[#allocation5 + $0x160] ss:$28 sps:$4 sm:$0xff]  }
 0x41b   :  { %v846_v59 = vsel %vm845_vm8, %v844_v58, 0.0 }
 0x41c   :  { %847 = vst [vmem:[#allocation7] sm:$0xff] %v846_v59 }
 0x469   :  { %v909_v61 = vpop.f32.mrf.mxu0 }
 0x46a   :  { %v910_v62 = vadd.f32 %v1615_v60, %v909_v61 }
 0x46b   :  { %v1803_v63 = vpop.f32.mrf.mxu0 }
 0x46c   :  { %v915_v0 = vmax.f32 %v910_v62, 0.0 }
 0x46d   :  { %v912_v1 = vpop.f32.mrf.mxu0 }
 0x46e   :  { %v916_v4 = vpack.c.bf16 %v915_v0, %v915_v0 }
 0x46f   :  { %v1804_v6 = vpop.f32.mrf.mxu0 }
 0x470   :  { %1339 = vmatmul.mubr.bf16.vlgmr.msra.gmra.mxu0 %v916_v4  ;;  %1380 = vmatmul.mubr.bf16.vlgmr.msra.gmra.mxu1 %v916_v4 }
 0x471   :  { %1389 = vmatpush1.bf16.msra.mxu0 %v1954_v2  ;;  %1806 = vmatpush3.bf16.msra.mxu1 %v1957_v3 }
 0x472   :  { %1390 = vmatprep.subr.bf16.mxu0 %v1960_v5  ;;  %1807 = vmatprep.subr.bf16.mxu1 %v2124_v43 }
 0x473   :  { %1420 = vmatprep.mubr.bf16.mxu0 %v2130_v56  ;;  %1821 = vmatprep.mubr.msk.bf16.mxu1 %vm2125_vm0, %v2124_v43 }
 0x475   :  { %1391 = vmatpush1.bf16.msra.mxu0 %v1958_v33  ;;  %1808 = vmatpush3.bf16.msra.mxu1 %v1961_v7 }
 0x476   :  { %1392 = vmatprep.subr.bf16.mxu0 %v1964_v8  ;;  %1809 = vmatprep.subr.bf16.mxu1 %v2124_v43 }
 0x479   :  { %1393 = vmatpush1.bf16.msra.mxu0 %v1962_v9  ;;  %1810 = vmatpush3.bf16.msra.mxu1 %v1965_v10 }
 0x47a   :  { %1394 = vmatprep.subr.bf16.mxu0 %v1968_v11  ;;  %1811 = vmatprep.subr.bf16.mxu1 %v2124_v43 }
 0x47d   :  { %1395 = vmatpush1.bf16.msra.mxu0 %v1966_v12  ;;  %1812 = vmatpush3.bf16.msra.mxu1 %v1969_v13 }
 0x47e   :  { %1396 = vmatprep.subr.bf16.mxu0 %v1972_v14  ;;  %1813 = vmatprep.subr.bf16.mxu1 %v2124_v43 }
 0x481   :  { %1397 = vmatpush1.bf16.msra.mxu0 %v1970_v15  ;;  %1814 = vmatpush3.bf16.msra.mxu1 %v1973_v16 }
 0x482   :  { %1398 = vmatprep.subr.bf16.mxu0 %v1976_v17  ;;  %1815 = vmatprep.subr.bf16.mxu1 %v2124_v43 }
 0x485   :  { %1399 = vmatpush1.bf16.msra.mxu0 %v1974_v18  ;;  %1816 = vmatpush3.bf16.msra.mxu1 %v1977_v19 }
 0x486   :  { %1400 = vmatprep.subr.bf16.mxu0 %v1980_v20  ;;  %1817 = vmatprep.subr.bf16.mxu1 %v2124_v43 }
 0x489   :  { %1401 = vmatpush1.bf16.msra.mxu0 %v1978_v21  ;;  %1818 = vmatpush3.bf16.msra.mxu1 %v1981_v22 }
 0x48a   :  { %1402 = vmatprep.subr.bf16.mxu0 %v1984_v23  ;;  %1819 = vmatprep.subr.bf16.mxu1 %v2124_v43 }
 0x48d   :  { %1403 = vmatpush1.bf16.msra.mxu0 %v1982_v24  ;;  %1820 = vmatpush3.bf16.msra.mxu1 %v1985_v25 }
 0x490   :  { %1421 = vmatmul.mubr.bf16.vlgmr.msra.gmra.mxu0 %v916_v4  ;;  %1822 = vmatmul.mubr.bf16.vlgmr.msra.gmra.mxu1 %v916_v4 }
 0x491   :  { %2081 = shalt.err (!%p2078_p0)
}
 0x492   :  { %1527 = dma.vmem_to_hbm [thread:$0]  %s1525_s22, 128, %s2313_s10, [#allocation4]   ;;  %v983_v26 = vlaneseq  ;;  %v981_v29 = vld [vmem:[%s2312_s9] sm:$0xff] }
 0x493   :  { %s2132_s9 = smov [#allocation8]  }
 0x494   :  { %v984_v43 = vshrl.u32 %v983_v26, 7  ;;  %s1534_s10 = sshll.u32 %s2132_s9, 4  ;;  %s1535_s10 = int_to_ptr.vmem [resolvable:$true] %s1534_s10 }
 0x495   :  { %s2090_s28 = scalar_lea.vmem %s1535_s10, 896  ;;  %p2095_p2 = scmp.lt.s32.totalorder %s1535_s10, %s1535_s10 }
 0x496   :  { %v985_v27 = vsub.s32 0, %v984_v43  ;;  %v993_v28 = vsub.s32 2, %v984_v43  ;;  %v989_v30 = vsub.s32 1, %v984_v43  ;;  %v997_v31 = vsub.s32 3, %v984_v43  ;;  %p2091_p1 = scmp.ne.s32.totalorder %s1535_s10, %s2090_s28  ;;  %p2096_p3 = scmp.lt.s32.totalorder %s2090_s28, %s2090_s28 }
 0x497   :  { %v1001_v62 = vsub.s32 4, %v984_v43  ;;  %v1009_v63 = vsub.s32 6, %v984_v43  ;;  %v1005_v0 = vsub.s32 5, %v984_v43 }
 0x498   :  { %v986_v32 = vrot.slane %v981_v29, %v985_v27  ;;  %v994_v34 = vrot.slane %v981_v29, %v993_v28  ;;  %v990_v35 = vrot.slane %v981_v29, %v989_v30  ;;  %v998_v36 = vrot.slane %v981_v29, %v997_v31  ;;  %p2097_p4 = por %p2096_p3, %p2095_p2 }
 0x499   :  { %v1002_v1 = vrot.slane %v981_v29, %v1001_v62  ;;  %v1010_v2 = vrot.slane %v981_v29, %v1009_v63  ;;  %v1006_v3 = vrot.slane %v981_v29, %v1005_v0 }
 0x49a   :  { %p2098_p5 = pnand %p2097_p4, %p2091_p1 }
 0x530   :  { %v1340_v37 = vpop.f32.mrf.mxu0  ;;  %v1381_v38 = vpop.f32.mrf.mxu1 }
 0x531   :  { %v1341_v39 = vadd.f32 %v1340_v37, %v986_v32  ;;  %v1382_v40 = vadd.f32 %v1381_v38, %v994_v34 }
 0x532   :  { %v1342_v41 = vpop.f32.mrf.mxu0  ;;  %v1383_v42 = vpop.f32.mrf.mxu1 }
 0x533   :  { %v1675_v44 = vmul.f32 -1.442695, %v1341_v39  ;;  %v1677_v45 = vmul.f32 -1.442695, %v1382_v40  ;;  %v1343_v46 = vadd.f32 %v1342_v41, %v990_v35  ;;  %v1384_v47 = vadd.f32 %v1383_v42, %v998_v36 }
 0x534   :  { %v1344_v48 = vpop.f32.mrf.mxu0  ;;  %v1385_v49 = vpop.f32.mrf.mxu1 }
 0x535   :  { %2002 = vpow2.f32 %v1675_v44  ;;  %v1676_v50 = vmul.f32 -1.442695, %v1343_v46  ;;  %v1678_v51 = vmul.f32 -1.442695, %v1384_v47 }
 0x536   :  { %2004 = vpow2.f32 %v1677_v45  ;;  %v1345_v52 = vpop.f32.mrf.mxu0  ;;  %v1386_v53 = vpop.f32.mrf.mxu1 }
 0x537   :  { %2006 = vpow2.f32 %v1676_v50 }
 0x538   :  { %2008 = vpow2.f32 %v1678_v51 }
 0x542   :  { %v2003_v54 = vpop.eup %2002 }
 0x543   :  { %v2005_v55 = vpop.eup %2004  ;;  %v1490_v56 = vadd.f32 1.0, %v2003_v54 }
 0x544   :  { %v2007_v57 = vpop.eup %2006  ;;  %v1492_v58 = vadd.f32 1.0, %v2005_v55 }
 0x545   :  { %v2009_v59 = vpop.eup %2008  ;;  %2010 = vrcp.f32 %v1490_v56  ;;  %v1491_v60 = vadd.f32 1.0, %v2007_v57 }
 0x546   :  { %2012 = vrcp.f32 %v1492_v58  ;;  %v1493_v61 = vadd.f32 1.0, %v2009_v59 }
 0x547   :  { %2014 = vrcp.f32 %v1491_v60 }
 0x548   :  { %2016 = vrcp.f32 %v1493_v61 }
 0x550   :  { %v1422_v4 = vpop.f32.mrf.mxu0  ;;  %v1463_v5 = vpop.f32.mrf.mxu1 }
 0x551   :  { %v1423_v6 = vadd.f32 %v1422_v4, %v1002_v1  ;;  %v1464_v33 = vadd.f32 %v1463_v5, %v1010_v2 }
 0x552   :  { %v2011_v7 = vpop.eup %2010  ;;  %v1424_v8 = vpop.f32.mrf.mxu0 }
 0x553   :  { %v1823_v9 = vpop.f32.mrf.mxu1  ;;  %v2013_v10 = vpop.eup %2012  ;;  %1511 = vst [vmem:[#allocation8] sm:$0xff] %v2011_v7  ;;  %v1679_v11 = vmul.f32 -1.442695, %v1423_v6  ;;  %v1681_v12 = vmul.f32 -1.442695, %v1464_v33  ;;  %v1425_v13 = vadd.f32 %v1424_v8, %v1006_v3 }
 0x554   :  { %v2015_v14 = vpop.eup %2014  ;;  %1513 = vst [vmem:[#allocation8 + $0x10] sm:$0xff] %v2013_v10  ;;  %v1426_v15 = vpop.f32.mrf.mxu0 }
 0x555   :  { %v1466_v16 = vpop.f32.mrf.mxu1  ;;  %v2017_v17 = vpop.eup %2016  ;;  %1512 = vst [vmem:[#allocation8 + $0x8] sm:$0xff] %v2015_v14  ;;  %2018 = vpow2.f32 %v1679_v11  ;;  %v1680_v18 = vmul.f32 -1.442695, %v1425_v13 }
 0x556   :  { %1514 = vst [vmem:[#allocation8 + $0x18] sm:$0xff] %v2017_v17  ;;  %2020 = vpow2.f32 %v1681_v12  ;;  %v1427_v19 = vpop.f32.mrf.mxu0 }
 0x557   :  { %v1824_v20 = vpop.f32.mrf.mxu1  ;;  %2022 = vpow2.f32 %v1680_v18 }
 0x562   :  { %v2019_v21 = vpop.eup %2018 }
 0x563   :  { %v2021_v22 = vpop.eup %2020  ;;  %v1494_v23 = vadd.f32 1.0, %v2019_v21 }
 0x564   :  { %v2023_v24 = vpop.eup %2022  ;;  %v1496_v25 = vadd.f32 1.0, %v2021_v22 }
 0x565   :  { %2024 = vrcp.f32 %v1494_v23  ;;  %v1495_v26 = vadd.f32 1.0, %v2023_v24 }
 0x566   :  { %2026 = vrcp.f32 %v1496_v25 }
 0x567   :  { %2028 = vrcp.f32 %v1495_v26 }
 0x572   :  { %v2025_v43 = vpop.eup %2024 }
 0x573   :  { %v2027_v27 = vpop.eup %2026  ;;  %1515 = vst [vmem:[#allocation8 + $0x20] sm:$0xff] %v2025_v43 }
 0x574   :  { %v2029_v28 = vpop.eup %2028  ;;  %1517 = vst [vmem:[#allocation8 + $0x30] sm:$0xff] %v2027_v27 }
 0x575   :  { %1516 = vst [vmem:[#allocation8 + $0x28] sm:$0xff] %v2029_v28 }
 0x576   :  { %2101 = shalt.err (!%p2098_p5)
}
 0x577   :  { %1537 = dma.vmem_to_hbm [thread:$0]  %s1535_s10, 896, %s2314_s11, [#allocation9]  }
 0x578   :  { %2114 = dma.done.wait [#allocation4], 128  }
 0x579   :  { %2115 = vsyncadd [#allocation4], 4294967168 }
 0x57a   :  { %2116 = dma.done.wait [#allocation9], 896  }
 0x57b   :  { %2117 = vsyncadd [#allocation9], 4294966400 }
 0x57c   :  { %1544 = vsyncpa [#allocation3], 1 }
 0x57d   :  { %1545 = vsyncpa [#allocation6], 1 }
 0x57e   :  { %1546 = vsyncpa [#allocation4], 1 }
 0x57f   :  { %1547 = vsyncpa [#allocation9], 1 }

</bundles_post_ra>
